<compile_context>
chip_gen: v7x
topology: tpu7x:2x2x1
jax: 0.10.0
libtpu: 0.0.40
codegen_flags: <defaults>
</compile_context>

<pallas_src>
import jax
import jax.numpy as jnp
from jax.experimental import pallas as pl
from jax.experimental.pallas import tpu as pltpu

LANES = 128  # pad all channel dims to one full vreg lane width


# ----------------------------------------------------------------------------
# Fused Pallas kernel: one batch element per grid step, everything in VMEM.
# ----------------------------------------------------------------------------
def _conv_block1_kernel(
    xcc_ref, xf_ref,                       # node features
    a_cf_ref, a_fp_ref, a_pp_ref,          # dense adjacencies
    w_cf_ref, b_cf_ref,                    # layerCenterFace   (cols padded to 128)
    w_fp_cc_ref, w_fp_f_ref, b_fp_ref,     # layerFacePoint    (concat folded, padded)
    w_pp_ref, b_pp_ref,                    # layerPointPoint   (padded)
    o_ref,                                 # [1, Np, 128] lane-dense output
):
    f32 = jnp.float32
    xcc = xcc_ref[0]                                       # [Nc, Ccc]
    xf = xf_ref[0]                                         # [Nf, Cf]

    # layerCenterFace: ReLU(A_cf @ xcc @ W_cf + b_cf) -> [Nf, 128] (cols >= ocf are 0)
    t = jnp.dot(xcc, w_cf_ref[...], preferred_element_type=f32)           # [Nc, 128]
    h1 = jnp.dot(a_cf_ref[...], t, preferred_element_type=f32) + b_cf_ref[...]
    h1 = jnp.maximum(h1, 0.0)

    # layerFacePoint with the concat folded in:
    #   cat([h1, xf], -1) @ W_fp == h1 @ W_fp[:ocf] + xf @ W_fp[ocf:]
    xw = (jnp.dot(h1, w_fp_cc_ref[...], preferred_element_type=f32)
          + jnp.dot(xf, w_fp_f_ref[...], preferred_element_type=f32))     # [Nf, 128]
    h2 = jnp.dot(a_fp_ref[...], xw, preferred_element_type=f32) + b_fp_ref[...]
    h2 = jnp.maximum(h2, 0.0)                                             # [Np, 128]

    # layerPointPoint: ReLU((A_pp @ h2) @ W_pp + b_pp)
    agg = jnp.dot(a_pp_ref[...], h2, preferred_element_type=f32)          # [Np, 128]
    h3 = jnp.dot(agg, w_pp_ref[...], preferred_element_type=f32) + b_pp_ref[...]
    o_ref[0] = jnp.maximum(h3, 0.0)                                       # lane-dense


# ----------------------------------------------------------------------------
# Wrapper: pads weights to 128 lanes, launches the fused kernel, slices output.
# ----------------------------------------------------------------------------
def conv_block1_forward(params, graphs, x_cell_centers, x_face):
    B, Nc, Ccc = x_cell_centers.shape
    _, Nf, Cf = x_face.shape
    Np = graphs["pointPoint"].shape[0]
    ocf = params["W_cf"].shape[1]          # out_channels_centerFace
    oc = params["W_pp"].shape[1]           # out_channels

    # zero-pad all weight output columns (and fused-concat rows) to 128 lanes
    w_cf = jnp.pad(params["W_cf"], ((0, 0), (0, LANES - ocf)))            # [Ccc, 128]
    b_cf = jnp.pad(params["b_cf"], (0, LANES - ocf)).reshape(1, LANES)
    w_fp_cc = jnp.pad(params["W_fp"][:ocf], ((0, LANES - ocf), (0, LANES - oc)))
    w_fp_f = jnp.pad(params["W_fp"][ocf:], ((0, 0), (0, LANES - oc)))     # [Cf, 128]
    b_fp = jnp.pad(params["b_fp"], (0, LANES - oc)).reshape(1, LANES)
    w_pp = jnp.pad(params["W_pp"], ((0, LANES - oc), (0, LANES - oc)))    # [128, 128]
    b_pp = jnp.pad(params["b_pp"], (0, LANES - oc)).reshape(1, LANES)

    out_padded = pl.pallas_call(
        _conv_block1_kernel,
        out_shape=jax.ShapeDtypeStruct((B, Np, LANES), jnp.float32),
        grid=(B,),
        in_specs=[
            pl.BlockSpec((1, Nc, Ccc), lambda b: (b, 0, 0)),
            pl.BlockSpec((1, Nf, Cf), lambda b: (b, 0, 0)),
            pl.BlockSpec((Nf, Nc), lambda b: (0, 0)),
            pl.BlockSpec((Np, Nf), lambda b: (0, 0)),
            pl.BlockSpec((Np, Np), lambda b: (0, 0)),
            pl.BlockSpec((Ccc, LANES), lambda b: (0, 0)),
            pl.BlockSpec((1, LANES), lambda b: (0, 0)),
            pl.BlockSpec((LANES, LANES), lambda b: (0, 0)),
            pl.BlockSpec((Cf, LANES), lambda b: (0, 0)),
            pl.BlockSpec((1, LANES), lambda b: (0, 0)),
            pl.BlockSpec((LANES, LANES), lambda b: (0, 0)),
            pl.BlockSpec((1, LANES), lambda b: (0, 0)),
        ],
        out_specs=pl.BlockSpec((1, Np, LANES), lambda b: (b, 0, 0)),
        compiler_params=pltpu.CompilerParams(dimension_semantics=("parallel",)),
    )(
        x_cell_centers, x_face,
        graphs["centerFace"], graphs["facePoint"], graphs["pointPoint"],
        w_cf, b_cf, w_fp_cc, w_fp_f, b_fp, w_pp, b_pp,
    )
    # single cheap slice at the very end (everything upstream was lane-dense)
    return out_padded[..., :oc]


# ----------------------------------------------------------------------------
# Pure-JAX reference (matches the assumed PyTorch semantics) for validation.
# ----------------------------------------------------------------------------
def conv_block1_reference(params, graphs, xcc, xf):
    h1 = jax.nn.relu(
        jnp.einsum("fc,bci->bfi", graphs["centerFace"], xcc) @ params["W_cf"]
        + params["b_cf"])
    x = jnp.concatenate([h1, xf], axis=-1)
    h2 = jax.nn.relu(
        jnp.einsum("pf,bfi->bpi", graphs["facePoint"], x) @ params["W_fp"]
        + params["b_fp"])
    h3 = jax.nn.relu(
        jnp.einsum("pq,bqi->bpi", graphs["pointPoint"], h2) @ params["W_pp"]
        + params["b_pp"])
    return h3


# ----------------------------------------------------------------------------
# Deterministic parameter / graph construction
# ----------------------------------------------------------------------------
def _init_linear(key, cin, cout):
    kw, kb = jax.random.split(key)
    scale = 1.0 / jnp.sqrt(jnp.float32(cin))
    W = jax.random.uniform(kw, (cin, cout), jnp.float32, -scale, scale)
    b = jax.random.uniform(kb, (cout,), jnp.float32, -scale, scale)
    return W, b


def _make_adj(key, n_dst, n_src, self_loops=False):
    km, kw = jax.random.split(key)
    mask = (jax.random.uniform(km, (n_dst, n_src)) < 0.25).astype(jnp.float32)
    w = jax.random.normal(kw, (n_dst, n_src), jnp.float32) * 0.3
    A = mask * w
    if self_loops:
        A = A + jnp.eye(n_dst, n_src, dtype=jnp.float32)
    return A


def build_params_and_graphs(key, n_centers, n_faces, n_points,
                            in_c_centers, in_c_faces, out_c_center_face, out_c):
    keys = jax.random.split(key, 8)
    p = {}
    p["W_cf"], p["b_cf"] = _init_linear(keys[0], in_c_centers, out_c_center_face)
    p["W_fp"], p["b_fp"] = _init_linear(keys[1], out_c_center_face + in_c_faces, out_c)
    p["W_pp"], p["b_pp"] = _init_linear(keys[2], out_c, out_c)

    g = {}
    g["centerFace"] = _make_adj(keys[4], n_faces, n_centers)
    g["facePoint"] = _make_adj(keys[5], n_points, n_faces)
    g["pointPoint"] = _make_adj(keys[6], n_points, n_points, self_loops=True)
    return p, g


# ----------------------------------------------------------------------------
if __name__ == "__main__":
    B = 2
    N_CENTERS, N_FACES, N_POINTS = 32, 48, 64
    IN_C_CENTERS, IN_C_FACES = 2, 3
    OUT_C_CENTER_FACE, OUT_C = 9, 12

    key = jax.random.PRNGKey(0)
    k_in1, k_in2, k_pg = jax.random.split(key, 3)

    params, graphs = build_params_and_graphs(
        k_pg, N_CENTERS, N_FACES, N_POINTS,
        IN_C_CENTERS, IN_C_FACES, OUT_C_CENTER_FACE, OUT_C)

    xCellCenters = jax.random.normal(k_in1, (B, N_CENTERS, IN_C_CENTERS), jnp.float32)
    xFace = jax.random.normal(k_in2, (B, N_FACES, IN_C_FACES), jnp.float32)

    out = conv_block1_forward(params, graphs, xCellCenters, xFace)
    out = jax.block_until_ready(out)

    assert out.shape == (B, N_POINTS, OUT_C), out.shape
    assert jnp.all(jnp.isfinite(out))

    ref = conv_block1_reference(params, graphs, xCellCenters, xFace)
    ref = jax.block_until_ready(ref)
    assert jnp.allclose(out, ref, rtol=1e-3, atol=1e-3), float(jnp.max(jnp.abs(out - ref)))

    print("KERNEL_OK")
</pallas_src>

<mosaic_0001>
module attributes {stable_mosaic.version = 11 : i64} {
  func.func @_conv_block1_kernel(%arg0: i32, %arg1: memref<1x32x2xf32, #tpu.memory_space<vmem>>, %arg2: memref<1x48x3xf32, #tpu.memory_space<vmem>>, %arg3: memref<48x32xf32, #tpu.memory_space<vmem>>, %arg4: memref<64x48xf32, #tpu.memory_space<vmem>>, %arg5: memref<64x64xf32, #tpu.memory_space<vmem>>, %arg6: memref<2x128xf32, #tpu.memory_space<vmem>>, %arg7: memref<1x128xf32, #tpu.memory_space<vmem>>, %arg8: memref<128x128xf32, #tpu.memory_space<vmem>>, %arg9: memref<3x128xf32, #tpu.memory_space<vmem>>, %arg10: memref<1x128xf32, #tpu.memory_space<vmem>>, %arg11: memref<128x128xf32, #tpu.memory_space<vmem>>, %arg12: memref<1x128xf32, #tpu.memory_space<vmem>>, %arg13: memref<1x64x128xf32, #tpu.memory_space<vmem>>) attributes {dimension_semantics = [#tpu.dimension_semantics<parallel>], iteration_bounds = array<i64: 2>, scalar_prefetch = 0 : i64, scratch_operands = 0 : i64, tpu.core_type = #tpu.core_type<tc>, window_params = [{transform_indices = @transform_0, window_bounds = array<i64: 1, 32, 2>}, {transform_indices = @transform_1, window_bounds = array<i64: 1, 48, 3>}, {pipeline_mode = #tpu.pipeline_mode<synchronous>, transform_indices = @transform_2, window_bounds = array<i64: 48, 32>}, {pipeline_mode = #tpu.pipeline_mode<synchronous>, transform_indices = @transform_3, window_bounds = array<i64: 64, 48>}, {pipeline_mode = #tpu.pipeline_mode<synchronous>, transform_indices = @transform_4, window_bounds = array<i64: 64, 64>}, {pipeline_mode = #tpu.pipeline_mode<synchronous>, transform_indices = @transform_5, window_bounds = array<i64: 2, 128>}, {pipeline_mode = #tpu.pipeline_mode<synchronous>, transform_indices = @transform_6, window_bounds = array<i64: 1, 128>}, {pipeline_mode = #tpu.pipeline_mode<synchronous>, transform_indices = @transform_7, window_bounds = array<i64: 128, 128>}, {pipeline_mode = #tpu.pipeline_mode<synchronous>, transform_indices = @transform_8, window_bounds = array<i64: 3, 128>}, {pipeline_mode = #tpu.pipeline_mode<synchronous>, transform_indices = @transform_9, window_bounds = array<i64: 1, 128>}, {pipeline_mode = #tpu.pipeline_mode<synchronous>, transform_indices = @transform_10, window_bounds = array<i64: 128, 128>}, {pipeline_mode = #tpu.pipeline_mode<synchronous>, transform_indices = @transform_11, window_bounds = array<i64: 1, 128>}, {transform_indices = @transform_12, window_bounds = array<i64: 1, 64, 128>}]} {
    %c0 = arith.constant 0 : index
    %c0_0 = arith.constant 0 : index
    %c0_1 = arith.constant 0 : index
    %0 = vector.load %arg1[%c0, %c0_0, %c0_1] : memref<1x32x2xf32, #tpu.memory_space<vmem>>, vector<1x32x2xf32>
    %1 = vector.shape_cast %0 : vector<1x32x2xf32> to vector<32x2xf32>
    %c0_2 = arith.constant 0 : index
    %c0_3 = arith.constant 0 : index
    %c0_4 = arith.constant 0 : index
    %2 = vector.load %arg2[%c0_2, %c0_3, %c0_4] : memref<1x48x3xf32, #tpu.memory_space<vmem>>, vector<1x48x3xf32>
    %3 = vector.shape_cast %2 : vector<1x48x3xf32> to vector<48x3xf32>
    %c0_5 = arith.constant 0 : index
    %c0_6 = arith.constant 0 : index
    %4 = vector.load %arg6[%c0_5, %c0_6] : memref<2x128xf32, #tpu.memory_space<vmem>>, vector<2x128xf32>
    %cst = arith.constant dense<0.000000e+00> : vector<32x128xf32>
    %5 = tpu.matmul %1, %4, %cst {dimension_numbers = #tpu.dot_dimension_numbers<[1], [0], [0], [1], [0, 0, 1, 1], [], []>} : vector<32x2xf32>, vector<2x128xf32>, vector<32x128xf32> -> vector<32x128xf32>
    %c0_7 = arith.constant 0 : index
    %c0_8 = arith.constant 0 : index
    %6 = vector.load %arg3[%c0_7, %c0_8] : memref<48x32xf32, #tpu.memory_space<vmem>>, vector<48x32xf32>
    %cst_9 = arith.constant dense<0.000000e+00> : vector<48x128xf32>
    %7 = tpu.matmul %6, %5, %cst_9 {dimension_numbers = #tpu.dot_dimension_numbers<[1], [0], [0], [1], [0, 0, 1, 1], [], []>} : vector<48x32xf32>, vector<32x128xf32>, vector<48x128xf32> -> vector<48x128xf32>
    %c0_10 = arith.constant 0 : index
    %c0_11 = arith.constant 0 : index
    %8 = vector.load %arg7[%c0_10, %c0_11] : memref<1x128xf32, #tpu.memory_space<vmem>>, vector<1x128xf32>
    %9 = vector.broadcast %8 : vector<1x128xf32> to vector<48x128xf32>
    %10 = arith.addf %7, %9 : vector<48x128xf32>
    %cst_12 = arith.constant 0.000000e+00 : f32
    %11 = vector.broadcast %cst_12 : f32 to vector<48x128xf32>
    %12 = arith.maximumf %10, %11 : vector<48x128xf32>
    %c0_13 = arith.constant 0 : index
    %c0_14 = arith.constant 0 : index
    %13 = vector.load %arg8[%c0_13, %c0_14] : memref<128x128xf32, #tpu.memory_space<vmem>>, vector<128x128xf32>
    %cst_15 = arith.constant dense<0.000000e+00> : vector<48x128xf32>
    %14 = tpu.matmul %12, %13, %cst_15 {dimension_numbers = #tpu.dot_dimension_numbers<[1], [0], [0], [1], [0, 0, 1, 1], [], []>} : vector<48x128xf32>, vector<128x128xf32>, vector<48x128xf32> -> vector<48x128xf32>
    %c0_16 = arith.constant 0 : index
    %c0_17 = arith.constant 0 : index
    %15 = vector.load %arg9[%c0_16, %c0_17] : memref<3x128xf32, #tpu.memory_space<vmem>>, vector<3x128xf32>
    %cst_18 = arith.constant dense<0.000000e+00> : vector<48x128xf32>
    %16 = tpu.matmul %3, %15, %cst_18 {dimension_numbers = #tpu.dot_dimension_numbers<[1], [0], [0], [1], [0, 0, 1, 1], [], []>} : vector<48x3xf32>, vector<3x128xf32>, vector<48x128xf32> -> vector<48x128xf32>
    %17 = arith.addf %14, %16 : vector<48x128xf32>
    %c0_19 = arith.constant 0 : index
    %c0_20 = arith.constant 0 : index
    %18 = vector.load %arg4[%c0_19, %c0_20] : memref<64x48xf32, #tpu.memory_space<vmem>>, vector<64x48xf32>
    %cst_21 = arith.constant dense<0.000000e+00> : vector<64x128xf32>
    %19 = tpu.matmul %18, %17, %cst_21 {dimension_numbers = #tpu.dot_dimension_numbers<[1], [0], [0], [1], [0, 0, 1, 1], [], []>} : vector<64x48xf32>, vector<48x128xf32>, vector<64x128xf32> -> vector<64x128xf32>
    %c0_22 = arith.constant 0 : index
    %c0_23 = arith.constant 0 : index
    %20 = vector.load %arg10[%c0_22, %c0_23] : memref<1x128xf32, #tpu.memory_space<vmem>>, vector<1x128xf32>
    %21 = vector.broadcast %20 : vector<1x128xf32> to vector<64x128xf32>
    %22 = arith.addf %19, %21 : vector<64x128xf32>
    %cst_24 = arith.constant 0.000000e+00 : f32
    %23 = vector.broadcast %cst_24 : f32 to vector<64x128xf32>
    %24 = arith.maximumf %22, %23 : vector<64x128xf32>
    %c0_25 = arith.constant 0 : index
    %c0_26 = arith.constant 0 : index
    %25 = vector.load %arg5[%c0_25, %c0_26] : memref<64x64xf32, #tpu.memory_space<vmem>>, vector<64x64xf32>
    %cst_27 = arith.constant dense<0.000000e+00> : vector<64x128xf32>
    %26 = tpu.matmul %25, %24, %cst_27 {dimension_numbers = #tpu.dot_dimension_numbers<[1], [0], [0], [1], [0, 0, 1, 1], [], []>} : vector<64x64xf32>, vector<64x128xf32>, vector<64x128xf32> -> vector<64x128xf32>
    %c0_28 = arith.constant 0 : index
    %c0_29 = arith.constant 0 : index
    %27 = vector.load %arg11[%c0_28, %c0_29] : memref<128x128xf32, #tpu.memory_space<vmem>>, vector<128x128xf32>
    %cst_30 = arith.constant dense<0.000000e+00> : vector<64x128xf32>
    %28 = tpu.matmul %26, %27, %cst_30 {dimension_numbers = #tpu.dot_dimension_numbers<[1], [0], [0], [1], [0, 0, 1, 1], [], []>} : vector<64x128xf32>, vector<128x128xf32>, vector<64x128xf32> -> vector<64x128xf32>
    %c0_31 = arith.constant 0 : index
    %c0_32 = arith.constant 0 : index
    %29 = vector.load %arg12[%c0_31, %c0_32] : memref<1x128xf32, #tpu.memory_space<vmem>>, vector<1x128xf32>
    %30 = vector.broadcast %29 : vector<1x128xf32> to vector<64x128xf32>
    %31 = arith.addf %28, %30 : vector<64x128xf32>
    %cst_33 = arith.constant 0.000000e+00 : f32
    %32 = vector.broadcast %cst_33 : f32 to vector<64x128xf32>
    %33 = arith.maximumf %31, %32 : vector<64x128xf32>
    %c0_34 = arith.constant 0 : index
    %c0_35 = arith.constant 0 : index
    %c0_36 = arith.constant 0 : index
    %34 = vector.load %arg13[%c0_34, %c0_35, %c0_36] : memref<1x64x128xf32, #tpu.memory_space<vmem>>, vector<1x64x128xf32>
    %35 = vector.shape_cast %34 : vector<1x64x128xf32> to vector<64x128xf32>
    %36 = vector.shape_cast %33 : vector<64x128xf32> to vector<1x64x128xf32>
    tpu.vector_store %arg13[%c0_34, %c0_35, %c0_36], %36 {strides = array<i32>} : memref<1x64x128xf32, #tpu.memory_space<vmem>>, vector<1x64x128xf32>,
    return
  }
  func.func @transform_0(%arg0: i32) -> (i32, i32, i32) {
    %c0_i32 = arith.constant 0 : i32
    %c0_i32_0 = arith.constant 0 : i32
    %c0_i32_1 = arith.constant 0 : i32
    return %arg0, %c0_i32, %c0_i32_0 : i32, i32, i32
  }
  func.func @transform_1(%arg0: i32) -> (i32, i32, i32) {
    %c0_i32 = arith.constant 0 : i32
    %c0_i32_0 = arith.constant 0 : i32
    %c0_i32_1 = arith.constant 0 : i32
    return %arg0, %c0_i32, %c0_i32_0 : i32, i32, i32
  }
  func.func @transform_2(%arg0: i32) -> (i32, i32) {
    %c0_i32 = arith.constant 0 : i32
    %c0_i32_0 = arith.constant 0 : i32
    %c0_i32_1 = arith.constant 0 : i32
    return %c0_i32, %c0_i32_0 : i32, i32
  }
  func.func @transform_3(%arg0: i32) -> (i32, i32) {
    %c0_i32 = arith.constant 0 : i32
    %c0_i32_0 = arith.constant 0 : i32
    %c0_i32_1 = arith.constant 0 : i32
    return %c0_i32, %c0_i32_0 : i32, i32
  }
  func.func @transform_4(%arg0: i32) -> (i32, i32) {
    %c0_i32 = arith.constant 0 : i32
    %c0_i32_0 = arith.constant 0 : i32
    %c0_i32_1 = arith.constant 0 : i32
    return %c0_i32, %c0_i32_0 : i32, i32
  }
  func.func @transform_5(%arg0: i32) -> (i32, i32) {
    %c0_i32 = arith.constant 0 : i32
    %c0_i32_0 = arith.constant 0 : i32
    %c0_i32_1 = arith.constant 0 : i32
    return %c0_i32, %c0_i32_0 : i32, i32
  }
  func.func @transform_6(%arg0: i32) -> (i32, i32) {
    %c0_i32 = arith.constant 0 : i32
    %c0_i32_0 = arith.constant 0 : i32
    %c0_i32_1 = arith.constant 0 : i32
    return %c0_i32, %c0_i32_0 : i32, i32
  }
  func.func @transform_7(%arg0: i32) -> (i32, i32) {
    %c0_i32 = arith.constant 0 : i32
    %c0_i32_0 = arith.constant 0 : i32
    %c0_i32_1 = arith.constant 0 : i32
    return %c0_i32, %c0_i32_0 : i32, i32
  }
  func.func @transform_8(%arg0: i32) -> (i32, i32) {
    %c0_i32 = arith.constant 0 : i32
    %c0_i32_0 = arith.constant 0 : i32
    %c0_i32_1 = arith.constant 0 : i32
    return %c0_i32, %c0_i32_0 : i32, i32
  }
  func.func @transform_9(%arg0: i32) -> (i32, i32) {
    %c0_i32 = arith.constant 0 : i32
    %c0_i32_0 = arith.constant 0 : i32
    %c0_i32_1 = arith.constant 0 : i32
    return %c0_i32, %c0_i32_0 : i32, i32
  }
  func.func @transform_10(%arg0: i32) -> (i32, i32) {
    %c0_i32 = arith.constant 0 : i32
    %c0_i32_0 = arith.constant 0 : i32
    %c0_i32_1 = arith.constant 0 : i32
    return %c0_i32, %c0_i32_0 : i32, i32
  }
  func.func @transform_11(%arg0: i32) -> (i32, i32) {
    %c0_i32 = arith.constant 0 : i32
    %c0_i32_0 = arith.constant 0 : i32
    %c0_i32_1 = arith.constant 0 : i32
    return %c0_i32, %c0_i32_0 : i32, i32
  }
  func.func @transform_12(%arg0: i32) -> (i32, i32, i32) {
    %c0_i32 = arith.constant 0 : i32
    %c0_i32_0 = arith.constant 0 : i32
    %c0_i32_1 = arith.constant 0 : i32
    return %arg0, %c0_i32, %c0_i32_0 : i32, i32, i32
  }
}

</mosaic_0001>

<bundles_post_ra>
// kernel: tpu_custom_call.1
= control target key start
LH: loop header
LB: loop body
LE: loop exit
PB: predicated region body
PF: predicated region fallthrough
CT: control target
= control target key end

     0   :  { %s2357_s0 = inlined_call_operand.vmem [shape: f32[2,32,2], index: 0, kind: input, shape index: {}]   ;;  %s2358_s1 = inlined_call_operand.vmem [shape: f32[2,48,3], index: 1, kind: input, shape index: {}]   ;;  %s2359_s2 = inlined_call_operand.vmem [shape: f32[48,32], index: 2, kind: input, shape index: {}]   ;;  %s2360_s3 = inlined_call_operand.vmem [shape: f32[64,48], index: 3, kind: input, shape index: {}]   ;;  %s2361_s4 = inlined_call_operand.vmem [shape: f32[64,64], index: 4, kind: input, shape index: {}]   ;;  %s2362_s5 = inlined_call_operand.vmem [shape: f32[2,128], index: 5, kind: input, shape index: {}]   ;;  %s2363_s6 = inlined_call_operand.vmem [shape: f32[1,128], index: 6, kind: input, shape index: {}]   ;;  %s2364_s7 = inlined_call_operand.vmem [shape: f32[128,128], index: 7, kind: input, shape index: {}]   ;;  %s2365_s8 = inlined_call_operand.vmem [shape: f32[3,128], index: 8, kind: input, shape index: {}]   ;;  %s2366_s9 = inlined_call_operand.vmem [shape: f32[1,128], index: 9, kind: input, shape index: {}]   ;;  %s2367_s10 = inlined_call_operand.vmem [shape: f32[128,128], index: 10, kind: input, shape index: {}]   ;;  %s2368_s11 = inlined_call_operand.vmem [shape: f32[1,128], index: 11, kind: input, shape index: {}]   ;;  %s2369_s12 = inlined_call_operand.hbm [shape: f32[2,64,128], index: 12, kind: output, shape index: {}]  }
   0x1   :  { %2370 = sst [smem:[#allocation5_spill]] %s2362_s5 }
   0x2   :  { %17 = vsyncpa [#allocation3], 0 }
   0x3   :  { %19 = vsyncpa [#allocation3 + $0x1], 0  ;;  %s2034_s21 = smov 0   ;;  %s2036_s22 = smov 0  }
   0x4   :  { %s2038_s23 = smov 0   ;;  %s2040_s24 = smov 0  }
   0x5 LB: > { %s2055_s25 = sadd.s32 4294967295, %s1964_s24   ;;  %s1431_s26 = sadd.s32 4294967294, %s1964_s24   ;;  %s1964_s24 = sphi %s2040_s24, %s2377_s24   ;;  %s1960_s23 = sphi %s2038_s23, %s2376_s23   ;;  %s1956_s22 = sphi %s2036_s22, %s2375_s22   ;;  %s1952_s21 = sphi %s2034_s21, %s2374_s21  }
   0x6   : > { %s2059_s27 = sadd.s32 1, %s1964_s24   ;;  %s294_s28 = sadd.s32 1, %s1960_s23 }
   0x7   : > { %s291_s29 = ssub.s32 %s1964_s24, %s2059_s27  ;;  %p304_p0 = scmp.ne.s32.totalorder %s1960_s23, %s1956_s22 }
   0x8   : > { %p292_p1 = scmp.eq.s32.totalorder %s291_s29, 0  ;;  %p305_p2 = scmp.eq.s32.totalorder %s2055_s25, 1 }
   0x9   : > { %p310_p3 = scmp.ne.s32.totalorder %s1956_s22, %s1952_s21  ;;  %p311_p4 = scmp.eq.s32.totalorder %s1431_s26, 1 }
   0xa   : > { %s2070_s30 = scalar_select %p292_p1, %s1960_s23, %s294_s28  }
   0xb   : > { %p2072_p5 = por %p305_p2, %p304_p0  ;;  %p2076_p6 = por %p311_p4, %p310_p3 }
   0xc   : > { %p1434_p7 = scmp.ge.s32.totalorder %s1964_s24, 1  ;;  %p375_p8 = scmp.lt.s32.totalorder %s1964_s24, 3 }
   0xe   : > { %p376_p9 = pnand %p1434_p7, %p375_p8 }
   0xf   : > { %s2373_s5 = sld [smem:[#allocation5_spill]] (!%p376_p9)  ;;  %vm456_vm0 = vcmask (!%p376_p9), 1041408   ;;  %p422_p10 = scmp.lt.s32.totalorder (!%p376_p9), %s2055_s25, 1  ;;  %vm443_vm1 = vcmask (!%p376_p9), 15360   ;;  %v545_v5 = vld [vmem:[%s2359_s2] sm:$0xff] (!%p376_p9)  ;;  %vm558_vm2 = vcmask (!%p376_p9), 261120  }
  0x10   : > { %379 = sbr.rel (%p376_p9) target bundleno = 1390 (0x56e), region = 68  ;;  %1597 = vmatprep.mubr.msk.f32.mxu1 (!%p376_p9), %vm558_vm2, %v545_v5  ;;  %v694_v6 = vld [vmem:[%s2365_s8] sm:$0x7] (!%p376_p9)  ;;  %vm714_vm3 = vcmask (!%p376_p9), 1042432   ;;  %vm695_vm4 = vcmask (!%p376_p9), 23552   ;;  %v679_v9 = vld [vmem:[%s2364_s7 + $0x8] sm:$0xff] (!%p376_p9) }
  0x11   : > { %v678_v8 = vld [vmem:[%s2364_s7] sm:$0xff] (!%p376_p9)  ;;  %v680_v11 = vld [vmem:[%s2364_s7 + $0x10] sm:$0xff] (!%p376_p9)  ;;  %v681_v13 = vld [vmem:[%s2364_s7 + $0x18] sm:$0xff] (!%p376_p9)  ;;  %vm923_vm5 = vcmask (!%p376_p9), 392192   ;;  %vm1069_vm6 = vcmask (!%p376_p9), 523264   ;;  %s419_s29 = sand.u32 (!%p376_p9), 1, %s1956_s22  }
  0x12   : > { %v1762_v12 = vpack.c.bf16 (!%p376_p9), %v679_v9, %v678_v8  ;;  %v1766_v14 = vpack.c.bf16 (!%p376_p9), %v681_v13, %v680_v11  ;;  %v682_v15 = vld [vmem:[%s2364_s7 + $0x20] sm:$0xff] (!%p376_p9)  ;;  %v683_v16 = vld [vmem:[%s2364_s7 + $0x28] sm:$0xff] (!%p376_p9)  ;;  %v684_v20 = vld [vmem:[%s2364_s7 + $0x30] sm:$0xff] (!%p376_p9)  ;;  %s1435_s19 = sshll.u32 (!%p376_p9), %s419_s29, 6  ;;  %s1482_s20 = sshll.u32 (!%p376_p9), %s2055_s25, 10 }
  0x13   : > { %v1770_v19 = vpack.c.bf16 (!%p376_p9), %v683_v16, %v682_v15  ;;  %v685_v21 = vld [vmem:[%s2364_s7 + $0x38] sm:$0xff] (!%p376_p9)  ;;  %v686_v23 = vld [vmem:[%s2364_s7 + $0x40] sm:$0xff] (!%p376_p9)  ;;  %v687_v24 = vld [vmem:[%s2364_s7 + $0x48] sm:$0xff] (!%p376_p9)  ;;  %s1966_s16 = smov (!%p376_p9), [#allocation2]  }
  0x14   : > { %v1774_v22 = vpack.c.bf16 (!%p376_p9), %v685_v21, %v684_v20  ;;  %v1778_v25 = vpack.c.bf16 (!%p376_p9), %v687_v24, %v686_v23  ;;  %v688_v26 = vld [vmem:[%s2364_s7 + $0x50] sm:$0xff] (!%p376_p9)  ;;  %v689_v27 = vld [vmem:[%s2364_s7 + $0x58] sm:$0xff] (!%p376_p9)  ;;  %v690_v29 = vld [vmem:[%s2364_s7 + $0x60] sm:$0xff] (!%p376_p9) }
  0x15   : > { %v442_v0 = vld [vmem:[%s2373_s5] sm:$0x3] (!%p376_p9)  ;;  %v1782_v28 = vpack.c.bf16 (!%p376_p9), %v689_v27, %v688_v26  ;;  %v691_v30 = vld [vmem:[%s2364_s7 + $0x68] sm:$0xff] (!%p376_p9)  ;;  %v547_v39 = vld [vmem:[%s2359_s2 + $0x10] sm:$0xff] (!%p376_p9) }
  0x16   : > { %1581 = vmatprep.subr.msk.mxu0 (!%p376_p9), %vm456_vm0, %v442_v0  ;;  %v1786_v31 = vpack.c.bf16 (!%p376_p9), %v691_v30, %v690_v29  ;;  %v546_v38 = vld [vmem:[%s2359_s2 + $0x8] sm:$0xff] (!%p376_p9)  ;;  %v548_v40 = vld [vmem:[%s2359_s2 + $0x18] sm:$0xff] (!%p376_p9)  ;;  %v549_v41 = vld [vmem:[%s2359_s2 + $0x20] sm:$0xff] (!%p376_p9) }
  0x17   : > { %1582 = vmatpush3.msk.msra.mxu0 %vm456_vm0, %v442_v0  ;;  %s423_s17 = scalar_select %p422_p10, %s2055_s25, 1  ;;  %v550_v42 = vld [vmem:[%s2359_s2 + $0x28] sm:$0xff]  ;;  %v692_v43 = vld [vmem:[%s2364_s7 + $0x70] sm:$0xff]  ;;  %v693_v44 = vld [vmem:[%s2364_s7 + $0x78] sm:$0xff] }
  0x18   : > { %1606 = vmatprep.subr.msk.mxu0 %vm714_vm3, %v694_v6  ;;  %v1790_v46 = vpack.c.bf16 %v693_v44, %v692_v43  ;;  %v1444_v48 = vld [vmem:[%s2363_s6] ss:$0 sm:$0xff]  ;;  %v909_v13 = vld [vmem:[%s2360_s3 + $0x8] sm:$0xff]  ;;  %v911_v15 = vld [vmem:[%s2360_s3 + $0x18] sm:$0xff]  ;;  %s2316_s25 = scalar_lea.sflag [#allocation3], %s419_s29 }
  0x19   : > { %s1481_s18 = sshll.u32 %s423_s17, 5  ;;  %s1860_s15 = smul.u32 48, %s423_s17  ;;  %v912_v16 = vld [vmem:[%s2360_s3 + $0x20] sm:$0xff] }
  0x1a   : > { %s426_s26 = scalar_lea.vmem %s2357_s0, %s1481_s18  ;;  %v1061_v20 = vld [vmem:[%s2361_s4] sm:$0xff]  ;;  %s2310_s17 = scalar_lea.hbm %s2369_s12, %s1482_s20 }
  0x1b   : > { %v432_v1 = vld [vmem:[%s426_s26] sm:$0xff]  ;;  %v433_v2 = vld [vmem:[%s426_s26 + $0x8] sm:$0xff]  ;;  %v434_v3 = vld [vmem:[%s426_s26 + $0x10] sm:$0xff]  ;;  %s2097_s18 = scalar_lea.vmem %s2358_s1, %s1860_s15 }
  0x1c   : > { %1583 = vmatprep.mubr.msk.f32.mxu0 %vm443_vm1, %v432_v1  ;;  %v435_v4 = vld [vmem:[%s426_s26 + $0x18] sm:$0xff]  ;;  %v436_v7 = vld [vmem:[%s2097_s18] sm:$0xff]  ;;  %v437_v10 = vld [vmem:[%s2097_s18 + $0x8] sm:$0xff] }
  0x1d   : > { %1584 = vmatmul.mubr.msk.f32.vlgmr.msra.gmra.mrb[0].mxu0 %vm443_vm1, %v433_v2  ;;  %v438_v17 = vld [vmem:[%s2097_s18 + $0x10] sm:$0xff]  ;;  %v439_v18 = vld [vmem:[%s2097_s18 + $0x18] sm:$0xff]  ;;  %v440_v45 = vld [vmem:[%s2097_s18 + $0x20] sm:$0xff] }
  0x1e   : > { %1586 = vmatprep.mubr.msk.f32.mxu0 %vm443_vm1, %v434_v3  ;;  %1607 = vmatpush3.msk.msra.mxu0 %vm714_vm3, %v694_v6  ;;  %v441_v47 = vld [vmem:[%s2097_s18 + $0x28] sm:$0xff]  ;;  %v908_v3 = vld [vmem:[%s2360_s3] sm:$0xff]  ;;  %s421_s18 = scalar_lea.vmem [#allocation2], %s1435_s19  ;;  %s1906_s19 = sshll.u32 %s1966_s16, 4  ;;  %s1907_s19 = int_to_ptr.vmem [resolvable:$false] %s1906_s19 }
  0x1f   : > { %1763 = vmatprep.subr.bf16.mxu0 %v1762_v12  ;;  %v1458_v21 = vld [vmem:[%s2366_s9] ss:$0 sm:$0xff]  ;;  %s1357_s26 = sshll.u32 %s421_s18, 4  ;;  %s1908_s20 = scalar_lea.vmem %s1907_s19, 2048  ;;  %s2312_s26 = int_to_ptr.vmem [resolvable:$true] %s1357_s26 }
  0x20   : > { %s1902_s15 = scalar_lea.vmem %s2312_s26, 1024  ;;  %p1909_p0 = scmp.lt.s32.totalorder %s2312_s26, %s1907_s19 }
  0x21   : > { %1587 = vmatmul.mubr.msk.f32.gmra.mrb[2].mxu0 %vm443_vm1, %v435_v4  ;;  %p1903_p11 = scmp.ne.s32.totalorder %s2312_s26, %s1902_s15  ;;  %p1910_p1 = scmp.lt.s32.totalorder %s1908_s20, %s1902_s15 }
  0x22   : > { %1608 = vmatprep.mubr.msk.f32.mxu0 %vm695_vm4, %v436_v7 }
  0x23   : > { %p1904_p12 = pnand %p1903_p11, %p2072_p5  ;;  %p1911_p2 = por %p1910_p1, %p1909_p0 }
  0x25   : > { %1609 = vmatmul.mubr.msk.f32.vlgmr.msra.gmra.mrb[4].mxu0 %vm695_vm4, %v437_v10  ;;  %p1905_p13 = pneg %p1904_p12 }
  0x26   : > { %1765 = vmatpush3.bf16.msra.mxu0 %v1762_v12  ;;  %1611 = vmatprep.mubr.msk.f32.mxu0 %vm695_vm4, %v438_v17  ;;  %v913_v17 = vld [vmem:[%s2360_s3 + $0x28] sm:$0xff] }
  0x27   : > { %1767 = vmatprep.subr.bf16.mxu0 %v1766_v14  ;;  %p1912_p3 = pnand %p1911_p2, %p1905_p13 }
  0x29   : > { %1612 = vmatmul.mubr.msk.f32.gmra.mrb[6].mxu0 %vm695_vm4, %v439_v18  ;;  %v914_v18 = vld [vmem:[%s2360_s3 + $0x30] sm:$0xff] }
  0x2a   : > { %1769 = vmatpush3.bf16.msra.mxu0 %v1766_v14  ;;  %1614 = vmatprep.mubr.msk.f32.mxu0 %vm695_vm4, %v440_v45  ;;  %v910_v14 = vld [vmem:[%s2360_s3 + $0x10] sm:$0xff] }
  0x2b   : > { %1771 = vmatprep.subr.bf16.mxu0 %v1770_v19 }
  0x2d   : > { %1615 = vmatmul.mubr.msk.f32.gmra.mrb[8].mxu0 %vm695_vm4, %v441_v47 }
  0x2e   : > { %1773 = vmatpush3.bf16.msra.mxu0 %v1770_v19  ;;  %v915_v19 = vld [vmem:[%s2360_s3 + $0x38] sm:$0xff] }
  0x2f   : > { %1775 = vmatprep.subr.bf16.mxu0 %v1774_v22 }
  0x32   : > { %1777 = vmatpush3.bf16.msra.mxu0 %v1774_v22 }
  0x33   : > { %1779 = vmatprep.subr.bf16.mxu0 %v1778_v25 }
  0x36   : > { %1781 = vmatpush3.bf16.msra.mxu0 %v1778_v25 }
  0x37   : > { %1783 = vmatprep.subr.bf16.mxu0 %v1782_v28 }
  0x3a   : > { %1785 = vmatpush3.bf16.msra.mxu0 %v1782_v28 }
  0x3b   : > { %1787 = vmatprep.subr.bf16.mxu0 %v1786_v31 }
  0x3e   : > { %1789 = vmatpush3.bf16.msra.mxu0 %v1786_v31 }
  0x3f   : > { %1791 = vmatprep.subr.bf16.mxu0 %v1790_v46 }
  0x42   : > { %1793 = vmatpush3.bf16.msra.mxu0 %v1790_v46 }
  0xf0   : > { %v1585_v32 = vpop.f32.mrb[0].mxu0 }
  0xf1   : > { %v526_v33 = vpop.f32.mrb[1].mxu0 }
  0xf2   : > { %v1754_v34 = vpack.c.bf16 %v1585_v32, %v526_v33 }
  0xf4   : > { %v1588_v35 = vpop.f32.mrb[2].mxu0  ;;  %1755 = vmatprep.subr.bf16.mxu1 %v1754_v34 }
  0xf5   : > { %v536_v36 = vpop.f32.mrb[3].mxu0  ;;  %1757 = vmatpush3.bf16.msra.mxu1 %v1754_v34 }
  0xf6   : > { %v1758_v37 = vpack.c.bf16 %v1588_v35, %v536_v36 }
  0xf8   : > { %1759 = vmatprep.subr.bf16.mxu1 %v1758_v37 }
  0xf9   : > { %1761 = vmatpush3.bf16.msra.mxu1 %v1758_v37 }
  0xfc   : > { %1598 = vmatmul.mubr.msk.f32.vlgmr.msra.gmra.mrb[0].mxu1 %vm558_vm2, %v546_v38 }
  0xfd   : > { %1600 = vmatprep.mubr.msk.f32.mxu1 %vm558_vm2, %v547_v39 }
 0x100   : > { %1601 = vmatmul.mubr.msk.f32.gmra.mrb[2].mxu1 %vm558_vm2, %v548_v40 }
 0x101   : > { %1603 = vmatprep.mubr.msk.f32.mxu1 %vm558_vm2, %v549_v41 }
 0x104   : > { %1604 = vmatmul.mubr.msk.f32.gmra.mrb[4].mxu1 %vm558_vm2, %v550_v42 }
 0x105   : > { %1698 = vmatprep.mubr.msk.f32.mxu1 %vm1069_vm6, %v1061_v20 }
 0x1cf   : > { %v1599_v49 = vpop.f32.mrb[0].mxu1 }
 0x1d0   : > { %v649_v50 = vadd.f32 %v1599_v49, %v1444_v48  ;;  %v643_v51 = vpop.f32.mrb[1].mxu1  ;;  %v1200_v49 = vld [vmem:[%s2367_s10 + $0x8] sm:$0xff] }
 0x1d1   : > { %v644_v52 = vadd.f32 %v1444_v48, %v643_v51 }
 0x1d2   : > { %v673_v55 = vmax.f32 %v649_v50, 0.0 }
 0x1d3   : > { %v672_v53 = vmax.f32 %v644_v52, 0.0  ;;  %v1602_v54 = vpop.f32.mrb[2].mxu1 }
 0x1d4   : > { %v659_v56 = vadd.f32 %v1602_v54, %v1444_v48  ;;  %v653_v57 = vpop.f32.mrb[3].mxu1  ;;  %v1202_v54 = vld [vmem:[%s2367_s10 + $0x18] sm:$0xff] }
 0x1d5   : > { %v654_v58 = vadd.f32 %v1444_v48, %v653_v57  ;;  %1649 = vmatprep.mubr.f32.mxu0 %v672_v53  ;;  %v1201_v53 = vld [vmem:[%s2367_s10 + $0x10] sm:$0xff] }
 0x1d6   : > { %1650 = vmatmul.mubr.f32.vlgmr.msra.gmra.mrb[4].mxu0 %v673_v55  ;;  %v675_v61 = vmax.f32 %v659_v56, 0.0  ;;  %v1062_v55 = vld [vmem:[%s2361_s4 + $0x8] sm:$0xff]  ;;  %v1063_v56 = vld [vmem:[%s2361_s4 + $0x10] sm:$0xff]  ;;  %v1826_v57 = vpack.c.bf16 %v1202_v54, %v1201_v53 }
 0x1d7   : > { %v674_v59 = vmax.f32 %v654_v58, 0.0  ;;  %v1605_v60 = vpop.f32.mrb[4].mxu1  ;;  %v1203_v58 = vld [vmem:[%s2367_s10 + $0x20] sm:$0xff] }
 0x1d8   : > { %v669_v62 = vadd.f32 %v1605_v60, %v1444_v48  ;;  %v663_v63 = vpop.f32.mrb[5].mxu1  ;;  %v1064_v60 = vld [vmem:[%s2361_s4 + $0x18] sm:$0xff] }
 0x1d9   : > { %v664_v0 = vadd.f32 %v1444_v48, %v663_v63  ;;  %1652 = vmatprep.mubr.f32.mxu0 %v674_v59  ;;  %v1199_v48 = vld [vmem:[%s2367_s10] sm:$0xff]  ;;  %v1204_v59 = vld [vmem:[%s2367_s10 + $0x28] sm:$0xff]  ;;  %v1205_v63 = vld [vmem:[%s2367_s10 + $0x30] sm:$0xff] }
 0x1da   : > { %1653 = vmatmul.mubr.f32.gmra.mrb[6].mxu0 %v675_v61  ;;  %v677_v2 = vmax.f32 %v669_v62, 0.0  ;;  %v1822_v52 = vpack.c.bf16 %v1200_v49, %v1199_v48  ;;  %v1065_v61 = vld [vmem:[%s2361_s4 + $0x20] sm:$0xff]  ;;  %v1830_v62 = vpack.c.bf16 %v1204_v59, %v1203_v58 }
 0x1db   : > { %v676_v1 = vmax.f32 %v664_v0, 0.0  ;;  %v1206_v0 = vld [vmem:[%s2367_s10 + $0x38] sm:$0xff] }
 0x1dd   : > { %1655 = vmatprep.mubr.f32.mxu0 %v676_v1  ;;  %v1066_v1 = vld [vmem:[%s2361_s4 + $0x28] sm:$0xff] }
 0x1de   : > { %1656 = vmatmul.mubr.f32.gmra.mrb[8].mxu0 %v677_v2  ;;  %v1067_v2 = vld [vmem:[%s2361_s4 + $0x30] sm:$0xff] }
 0x1df   : > { %1670 = vmatprep.mubr.msk.f32.mxu0 %vm923_vm5, %v908_v3  ;;  %v1834_v3 = vpack.c.bf16 %v1206_v0, %v1205_v63 }
 0x2a9   : > { %v1651_v4 = vpop.f32.mrb[4].mxu0 }
 0x2aa   : > { %v879_v5 = vpop.f32.mrb[5].mxu0 }
 0x2ab   : > { %v1794_v6 = vpack.c.bf16 %v1651_v4, %v879_v5  ;;  %v1207_v4 = vld [vmem:[%s2367_s10 + $0x40] sm:$0xff]  ;;  %v1208_v5 = vld [vmem:[%s2367_s10 + $0x48] sm:$0xff] }
 0x2ad   : > { %v1654_v7 = vpop.f32.mrb[6].mxu0  ;;  %1795 = vmatprep.subr.bf16.mxu0 %v1794_v6 }
 0x2ae   : > { %v889_v8 = vpop.f32.mrb[7].mxu0  ;;  %1797 = vmatpush3.bf16.msra.mxu0 %v1794_v6  ;;  %v1068_v6 = vld [vmem:[%s2361_s4 + $0x38] sm:$0xff] }
 0x2af   : > { %v1798_v9 = vpack.c.bf16 %v1654_v7, %v889_v8  ;;  %v1838_v7 = vpack.c.bf16 %v1208_v5, %v1207_v4  ;;  %v1209_v8 = vld [vmem:[%s2367_s10 + $0x50] sm:$0xff] }
 0x2b1   : > { %v1657_v10 = vpop.f32.mrb[8].mxu0  ;;  %1799 = vmatprep.subr.bf16.mxu0 %v1798_v9 }
 0x2b2   : > { %v899_v11 = vpop.f32.mrb[9].mxu0  ;;  %1801 = vmatpush3.bf16.msra.mxu0 %v1798_v9  ;;  %v1210_v9 = vld [vmem:[%s2367_s10 + $0x58] sm:$0xff] }
 0x2b3   : > { %v1802_v12 = vpack.c.bf16 %v1657_v10, %v899_v11  ;;  %v1842_v10 = vpack.c.bf16 %v1210_v9, %v1209_v8  ;;  %v1211_v11 = vld [vmem:[%s2367_s10 + $0x60] sm:$0xff] }
 0x2b5   : > { %1803 = vmatprep.subr.bf16.mxu0 %v1802_v12 }
 0x2b6   : > { %1805 = vmatpush3.bf16.msra.mxu0 %v1802_v12  ;;  %v1212_v12 = vld [vmem:[%s2367_s10 + $0x68] sm:$0xff] }
 0x2b9   : > { %1671 = vmatmul.mubr.msk.f32.vlgmr.msra.gmra.mrb[10].mxu0 %vm923_vm5, %v909_v13  ;;  %v1846_v13 = vpack.c.bf16 %v1212_v12, %v1211_v11 }
 0x2ba   : > { %1673 = vmatprep.mubr.msk.f32.mxu0 %vm923_vm5, %v910_v14  ;;  %v1213_v14 = vld [vmem:[%s2367_s10 + $0x70] sm:$0xff] }
 0x2bd   : > { %1674 = vmatmul.mubr.msk.f32.gmra.mrb[12].mxu0 %vm923_vm5, %v911_v15  ;;  %v1214_v15 = vld [vmem:[%s2367_s10 + $0x78] sm:$0xff] }
 0x2be   : > { %1676 = vmatprep.mubr.msk.f32.mxu0 %vm923_vm5, %v912_v16  ;;  %v1850_v16 = vpack.c.bf16 %v1214_v15, %v1213_v14 }
 0x2c1   : > { %1677 = vmatmul.mubr.msk.f32.gmra.mrb[14].mxu0 %vm923_vm5, %v913_v17 }
 0x2c2   : > { %1679 = vmatprep.mubr.msk.f32.mxu0 %vm923_vm5, %v914_v18 }
 0x2c5   : > { %1680 = vmatmul.mubr.msk.f32.gmra.mrb[16].mxu0 %vm923_vm5, %v915_v19 }
 0x38c   : > { %v1672_v22 = vpop.f32.mrb[10].mxu0 }
 0x38d   : > { %v1020_v23 = vadd.f32 %v1672_v22, %v1458_v21  ;;  %v1014_v24 = vpop.f32.mrb[11].mxu0 }
 0x38e   : > { %v1015_v25 = vadd.f32 %v1458_v21, %v1014_v24 }
 0x38f   : > { %v1054_v26 = vmax.f32 %v1020_v23, 0.0 }
 0x390   : > { %v1053_v27 = vmax.f32 %v1015_v25, 0.0  ;;  %v1675_v28 = vpop.f32.mrb[12].mxu0  ;;  %v1475_v25 = vld [vmem:[%s2368_s11] ss:$0 sm:$0xff] }
 0x391   : > { %v1030_v29 = vadd.f32 %v1675_v28, %v1458_v21  ;;  %v1024_v30 = vpop.f32.mrb[13].mxu0 }
 0x392   : > { %v1806_v31 = vpack.c.bf16 %v1054_v26, %v1053_v27  ;;  %v1025_v32 = vadd.f32 %v1458_v21, %v1024_v30 }
 0x393   : > { %v1056_v33 = vmax.f32 %v1030_v29, 0.0 }
 0x394   : > { %v1055_v34 = vmax.f32 %v1025_v32, 0.0  ;;  %v1678_v35 = vpop.f32.mrb[14].mxu0  ;;  %1807 = vmatprep.subr.bf16.mxu1 %v1806_v31 }
 0x395   : > { %v1040_v36 = vadd.f32 %v1678_v35, %v1458_v21  ;;  %v1034_v37 = vpop.f32.mrb[15].mxu0  ;;  %1809 = vmatpush3.bf16.msra.mxu1 %v1806_v31 }
 0x396   : > { %v1810_v38 = vpack.c.bf16 %v1056_v33, %v1055_v34  ;;  %v1035_v39 = vadd.f32 %v1458_v21, %v1034_v37 }
 0x397   : > { %v1058_v40 = vmax.f32 %v1040_v36, 0.0 }
 0x398   : > { %v1057_v41 = vmax.f32 %v1035_v39, 0.0  ;;  %v1681_v42 = vpop.f32.mrb[16].mxu0  ;;  %1811 = vmatprep.subr.bf16.mxu1 %v1810_v38 }
 0x399   : > { %v1050_v43 = vadd.f32 %v1681_v42, %v1458_v21  ;;  %v1044_v44 = vpop.f32.mrb[17].mxu0  ;;  %1813 = vmatpush3.bf16.msra.mxu1 %v1810_v38 }
 0x39a   : > { %v1814_v45 = vpack.c.bf16 %v1058_v40, %v1057_v41  ;;  %v1045_v46 = vadd.f32 %v1458_v21, %v1044_v44 }
 0x39b   : > { %v1060_v47 = vmax.f32 %v1050_v43, 0.0 }
 0x39c   : > { %v1059_v50 = vmax.f32 %v1045_v46, 0.0  ;;  %1815 = vmatprep.subr.bf16.mxu1 %v1814_v45 }
 0x39d   : > { %1817 = vmatpush3.bf16.msra.mxu1 %v1814_v45 }
 0x39e   : > { %v1818_v51 = vpack.c.bf16 %v1060_v47, %v1059_v50 }
 0x3a0   : > { %1819 = vmatprep.subr.bf16.mxu1 %v1818_v51 }
 0x3a1   : > { %1821 = vmatpush3.bf16.msra.mxu1 %v1818_v51 }
 0x3a2   : > { %1823 = vmatprep.subr.bf16.mxu1 %v1822_v52 }
 0x3a4   : > { %1699 = vmatmul.mubr.msk.f32.vlgmr.msra.gmra.mrb[6].mxu1 %vm1069_vm6, %v1062_v55 }
 0x3a5   : > { %1701 = vmatprep.mubr.msk.f32.mxu1 %vm1069_vm6, %v1063_v56  ;;  %1825 = vmatpush3.bf16.msra.mxu1 %v1822_v52 }
 0x3a6   : > { %1827 = vmatprep.subr.bf16.mxu1 %v1826_v57 }
 0x3a8   : > { %1702 = vmatmul.mubr.msk.f32.gmra.mrb[8].mxu1 %vm1069_vm6, %v1064_v60 }
 0x3a9   : > { %1704 = vmatprep.mubr.msk.f32.mxu1 %vm1069_vm6, %v1065_v61  ;;  %1829 = vmatpush3.bf16.msra.mxu1 %v1826_v57 }
 0x3aa   : > { %1831 = vmatprep.subr.bf16.mxu1 %v1830_v62 }
 0x3ac   : > { %1705 = vmatmul.mubr.msk.f32.gmra.mrb[10].mxu1 %vm1069_vm6, %v1066_v1 }
 0x3ad   : > { %1707 = vmatprep.mubr.msk.f32.mxu1 %vm1069_vm6, %v1067_v2  ;;  %1833 = vmatpush3.bf16.msra.mxu1 %v1830_v62 }
 0x3ae   : > { %1835 = vmatprep.subr.bf16.mxu1 %v1834_v3 }
 0x3b0   : > { %1708 = vmatmul.mubr.msk.f32.gmra.mrb[12].mxu1 %vm1069_vm6, %v1068_v6 }
 0x3b1   : > { %1837 = vmatpush3.bf16.msra.mxu1 %v1834_v3 }
 0x3b2   : > { %1839 = vmatprep.subr.bf16.mxu1 %v1838_v7 }
 0x3b5   : > { %1841 = vmatpush3.bf16.msra.mxu1 %v1838_v7 }
 0x3b6   : > { %1843 = vmatprep.subr.bf16.mxu1 %v1842_v10 }
 0x3b9   : > { %1845 = vmatpush3.bf16.msra.mxu1 %v1842_v10 }
 0x3ba   : > { %1847 = vmatprep.subr.bf16.mxu1 %v1846_v13 }
 0x3bd   : > { %1849 = vmatpush3.bf16.msra.mxu1 %v1846_v13 }
 0x3be   : > { %1851 = vmatprep.subr.bf16.mxu1 %v1850_v16 }
 0x3c1   : > { %1853 = vmatpush3.bf16.msra.mxu1 %v1850_v16 }
 0x477   : > { %v1700_v17 = vpop.f32.mrb[6].mxu1 }
 0x478   : > { %v1160_v18 = vpop.f32.mrb[7].mxu1 }
 0x479   : > { %1742 = vmatprep.mubr.f32.mxu1 %v1160_v18 }
 0x47a   : > { %1743 = vmatmul.mubr.f32.vlgmr.msra.gmra.mrb[14].mxu1 %v1700_v17 }
 0x47b   : > { %v1703_v19 = vpop.f32.mrb[8].mxu1 }
 0x47c   : > { %v1170_v20 = vpop.f32.mrb[9].mxu1 }
 0x47d   : > { %1745 = vmatprep.mubr.f32.mxu1 %v1170_v20 }
 0x47e   : > { %1746 = vmatmul.mubr.f32.gmra.mrb[16].mxu1 %v1703_v19 }
 0x47f   : > { %v1706_v21 = vpop.f32.mrb[10].mxu1 }
 0x480   : > { %v1180_v22 = vpop.f32.mrb[11].mxu1 }
 0x481   : > { %1748 = vmatprep.mubr.f32.mxu1 %v1180_v22 }
 0x482   : > { %1749 = vmatmul.mubr.f32.gmra.mrb[18].mxu1 %v1706_v21 }
 0x483   : > { %v1709_v23 = vpop.f32.mrb[12].mxu1 }
 0x484   : > { %v1190_v24 = vpop.f32.mrb[13].mxu1 }
 0x485   : > { %1751 = vmatprep.mubr.f32.mxu1 %v1190_v24 }
 0x486   : > { %1752 = vmatmul.mubr.f32.gmra.mrb[20].mxu1 %v1709_v23 }
 0x54d   : > { %v1744_v26 = vpop.f32.mrb[14].mxu1 }
 0x54e   : > { %v1294_v27 = vadd.f32 %v1744_v26, %v1475_v25  ;;  %v1288_v28 = vpop.f32.mrb[15].mxu1 }
 0x54f   : > { %v1289_v29 = vadd.f32 %v1475_v25, %v1288_v28 }
 0x550   : > { %v1328_v30 = vmax.f32 %v1294_v27, 0.0 }
 0x551   : > { %v1327_v31 = vmax.f32 %v1289_v29, 0.0  ;;  %v1747_v32 = vpop.f32.mrb[16].mxu1 }
 0x552   : > { %1336 = vst [vmem:[%s421_s18 + $0x8] sm:$0xff] %v1328_v30  ;;  %v1304_v33 = vadd.f32 %v1747_v32, %v1475_v25  ;;  %v1298_v34 = vpop.f32.mrb[17].mxu1 }
 0x553   : > { %1335 = vst [vmem:[%s421_s18] sm:$0xff] %v1327_v31  ;;  %v1299_v35 = vadd.f32 %v1475_v25, %v1298_v34 }
 0x554   : > { %v1330_v36 = vmax.f32 %v1304_v33, 0.0 }
 0x555   : > { %v1329_v37 = vmax.f32 %v1299_v35, 0.0  ;;  %v1750_v38 = vpop.f32.mrb[18].mxu1 }
 0x556   : > { %1338 = vst [vmem:[%s421_s18 + $0x18] sm:$0xff] %v1330_v36  ;;  %v1314_v39 = vadd.f32 %v1750_v38, %v1475_v25  ;;  %v1308_v40 = vpop.f32.mrb[19].mxu1 }
 0x557   : > { %1337 = vst [vmem:[%s421_s18 + $0x10] sm:$0xff] %v1329_v37  ;;  %v1309_v41 = vadd.f32 %v1475_v25, %v1308_v40 }
 0x558   : > { %v1332_v42 = vmax.f32 %v1314_v39, 0.0 }
 0x559   : > { %v1331_v43 = vmax.f32 %v1309_v41, 0.0  ;;  %v1753_v44 = vpop.f32.mrb[20].mxu1 }
 0x55a   : > { %1340 = vst [vmem:[%s421_s18 + $0x28] sm:$0xff] %v1332_v42  ;;  %v1324_v45 = vadd.f32 %v1753_v44, %v1475_v25  ;;  %v1318_v46 = vpop.f32.mrb[21].mxu1 }
 0x55b   : > { %1339 = vst [vmem:[%s421_s18 + $0x20] sm:$0xff] %v1331_v43  ;;  %v1319_v47 = vadd.f32 %v1475_v25, %v1318_v46 }
 0x55c   : > { %v1334_v48 = vmax.f32 %v1324_v45, 0.0 }
 0x55d   : > { %v1333_v49 = vmax.f32 %v1319_v47, 0.0 }
 0x55e   : > { %1342 = vst [vmem:[%s421_s18 + $0x38] sm:$0xff] %v1334_v48 }
 0x55f   : > { %1341 = vst [vmem:[%s421_s18 + $0x30] sm:$0xff] %v1333_v49 }
 0x560   : > { %1915 = shalt.err (!%p1912_p3)
}
 0x561   : > { %s1916_s29 = scalar_lea.hbm %s2310_s17, 1024  ;;  %s1920_s5 = scalar_lea.hbm %s2369_s12, 2048 }
 0x562   : > { %p1917_p4 = scmp.ne.s32.totalorder %s2310_s17, %s1916_s29  ;;  %p1921_p9 = scmp.lt.u32.totalorder %s2310_s17, %s2369_s12 }
 0x563   : > { %p1922_p10 = scmp.lt.u32.totalorder %s1920_s5, %s1916_s29  ;;  %p1924_p12 = scmp.lt.u32.totalorder %s1916_s29, %s2310_s17 }
 0x564   : > { %p1918_p7 = pnand %p1917_p4, %p2072_p5 }
 0x565   : > { %p1923_p11 = por %p1922_p10, %p1921_p9 }
 0x566   : > { %p1919_p8 = pneg %p1918_p7 }
 0x567   : > { %p1925_p13 = por %p1924_p12, %p1923_p11 }
 0x569   : > { %p1926_p0 = pnand %p1925_p13, %p1919_p8 }
 0x56b   : > { %1929 = shalt.err (!%p1926_p0)
}
 0x56c   : > { %s1967_s15 = smov 128   ;;  %s1968_s20 = smov 8  }
 0x56d   : > { %1861 = dma.vmem_to_hbm [thread:$0]  (%p2072_p5), %s2312_s26, 1024, %s2310_s17, %s2316_s25, %s1967_s15, %s1967_s15, %s1968_s20  }
 0x56e PF: > { %p1867_p1 = scmp.ge.s32.totalorder %s1964_s24, 2  ;;  %s1372_s18 = sand.u32 1, %s1952_s21  }
 0x56f   : > { %s1373_s29 = scalar_lea.sflag [#allocation3], %s1372_s18 }
 0x570   : > { %p1864_p2 = pnand %p1867_p1, %p2076_p6 }
 0x572   : > { %1947 = dma.done.wait (!%p1864_p2), %s1373_s29, 1024  }
 0x573   : > { %1949 = vsyncadd (!%p1864_p2), %s1373_s29, 4294966272  ;;  %p22_p3 = scmp.ge.s32.totalorder %s2059_s27, 4   ;;  %s2374_s21 = smov %s1956_s22 }
 0x574   : > { %s2375_s22 = smov %s1960_s23  ;;  %s2376_s23 = smov %s2070_s30 }
 0x575   : > { %s2377_s24 = smov %s2059_s27  ;;  %24 = sbr.rel (!%p22_p3) target bundleno = 5 (0x5), region = 106 }
 0x57c   :  { %1378 = vsyncpa [#allocation3], 1 }
 0x57d   :  { %1380 = vsyncpa [#allocation3 + $0x1], 1 }

</bundles_post_ra>
